<compile_context>
chip_gen: v6e
topology: v6e:2x2x1
jax: 0.10.0
libtpu: 0.0.40
codegen_flags: <defaults>
</compile_context>

<pallas_src>
import jax
import jax.numpy as jnp
from jax.experimental import pallas as pl
from jax.experimental.pallas import tpu as pltpu


def _round_up(x, m):
    return ((x + m - 1) // m) * m


def _pick_divisor_tile(total, desired, align):
    """Largest multiple of `align` that divides `total` and is <= desired."""
    if total <= desired:
        return total
    best = align
    t = align
    while t <= desired:
        if total % t == 0:
            best = t
        t += align
    return best


def _vmem_budget_bytes():
    try:
        cap = int(pltpu.get_tpu_info().vmem_capacity_bytes)
    except Exception:
        cap = 64 << 20  # conservative fallback (correct for every generation)
    # Leave headroom for Mosaic internal scratch / semaphores:
    #   128 MiB (v5e/v6e) -> ~96 MiB usable, 64 MiB (v7x) -> ~48 MiB usable.
    return min((cap * 3) // 4, 100 << 20)


# ----------------------------- kernels --------------------------------------

def _linear_fullk_kernel(x_ref, wt_ref, b_ref, o_ref):
    # Full K resident: single MXU pass, no accumulator VMEM round-trip.
    o_ref[...] = (
        jnp.dot(x_ref[...], wt_ref[...], preferred_element_type=jnp.float32)
        + b_ref[...].astype(jnp.float32)
    ).astype(o_ref.dtype)


def _linear_ktiled_kernel(x_ref, wt_ref, b_ref, o_ref, acc_ref):
    # grid = (rows, out-cols, K); K last and "arbitrary".
    k = pl.program_id(2)

    @pl.when(k == 0)
    def _init():
        acc_ref[...] = jnp.zeros_like(acc_ref)

    acc_ref[...] += jnp.dot(
        x_ref[...], wt_ref[...], preferred_element_type=jnp.float32)

    @pl.when(k == pl.num_programs(2) - 1)
    def _finalize():
        o_ref[...] = (
            acc_ref[...] + b_ref[...].astype(jnp.float32)
        ).astype(o_ref.dtype)


# ----------------------------- wrapper ---------------------------------------

def proj_head_prepare_params(weight, bias):
    """Done ONCE at init: transpose + pad weight/bias to lane multiples.

    weight: [out_dim, in_dim] (PyTorch nn.Linear layout), bias: [out_dim].
    Returns (wt_padded [k_pad, m_pad], bias_padded [1, m_pad]).
    """
    w = jnp.asarray(weight)
    b = jnp.asarray(bias)
    out_dim, in_dim = w.shape
    k_pad = _round_up(in_dim, 128)
    m_pad = _round_up(out_dim, 128)
    wt = jnp.pad(w.T, ((0, k_pad - in_dim), (0, m_pad - out_dim)))
    bp = jnp.pad(b, (0, m_pad - out_dim)).reshape(1, m_pad)
    return wt, bp


def proj_head_forward(x, wt, bias_p, *, out_dim):
    """Pallas ProjHead.forward:  y = x @ W^T + b.

    x:      [..., in_dim]
    wt:     [k_pad, m_pad]  pre-transposed + pre-padded weight (prepare_params)
    bias_p: [1, m_pad]      pre-padded bias
    out_dim: true number of output features (static)
    """
    orig_shape = x.shape
    in_dim = orig_shape[-1]
    k_pad, m_pad = wt.shape
    assert k_pad >= in_dim and m_pad >= out_dim

    x2 = x.reshape(-1, in_dim)
    n = x2.shape[0]

    x_isz = jnp.dtype(x.dtype).itemsize
    w_isz = jnp.dtype(wt.dtype).itemsize
    b_isz = jnp.dtype(bias_p.dtype).itemsize
    o_isz = x_isz
    pack = max(8, 32 // x_isz)  # sublane pack: 8/f32, 16/bf16, 32/int8

    budget = _vmem_budget_bytes()

    def needed(tn, tm, tk, full_k):
        b = (2 * tn * tk * x_isz          # double-buffered activation blocks
             + 2 * tk * tm * w_isz        # double-buffered weight blocks
             + 2 * 8 * tm * b_isz         # bias (sublane-padded), double-buffered
             + 2 * tn * tm * o_isz)       # output block + writeback buffer
        if not full_k:
            b += tn * tm * 4              # f32 accumulator scratch
        return b + (2 << 20)              # Mosaic internal scratch slack

    # ---- tile selection ------------------------------------------------------
    tile_m = _pick_divisor_tile(m_pad, 1024, 128)
    tile_n = min(_round_up(n, pack), 2048)

    # Full-K fast path first; shrink the row tile until it fits the budget.
    tile_k = k_pad
    while needed(tile_n, tile_m, tile_k, True) > budget and tile_n > pack:
        tile_n = max(pack, _round_up(tile_n // 2, pack))
    full_k = needed(tile_n, tile_m, tile_k, True) <= budget

    if not full_k:
        tile_k = _pick_divisor_tile(k_pad, 2048, 128)
        while needed(tile_n, tile_m, tile_k, False) > budget and tile_k > 128:
            tile_k = _pick_divisor_tile(k_pad, tile_k - 128, 128)
        while needed(tile_n, tile_m, tile_k, False) > budget and tile_m > 128:
            tile_m = _pick_divisor_tile(m_pad, tile_m - 128, 128)
        while needed(tile_n, tile_m, tile_k, False) > budget and tile_n > pack:
            tile_n = max(pack, _round_up(tile_n // 2, pack))

    # v7x megacore: prefer >=2 steps along a parallel axis when shapes allow
    # (harmless on v5e/v6e, which have a single TensorCore).
    if _round_up(n, tile_n) // tile_n == 1 and m_pad // tile_m == 1:
        if n > pack:
            tile_n = _round_up(pl.cdiv(n, 2), pack)
        elif m_pad // 128 >= 2:
            tile_m = _pick_divisor_tile(m_pad, m_pad // 2, 128)

    n_pad = _round_up(n, tile_n)

    # Only the activations are padded per call (weight/bias padded at init);
    # zero-padding is inert in the matmul and sliced off below.
    xp = x2
    if n_pad != n or k_pad != in_dim:
        xp = jnp.pad(x2, ((0, n_pad - n), (0, k_pad - in_dim)))

    kernel_bytes = needed(tile_n, tile_m, tile_k, full_k)
    vmem_limit = int(min(max(kernel_bytes + (4 << 20), 32 << 20),
                         budget + (8 << 20)))

    cost = pl.CostEstimate(
        flops=2 * n_pad * k_pad * m_pad,
        transcendentals=0,
        bytes_accessed=(xp.size * x_isz + wt.size * w_isz
                        + bias_p.size * b_isz + n_pad * m_pad * o_isz))

    if full_k:
        grid = (n_pad // tile_n, m_pad // tile_m)
        out_padded = pl.pallas_call(
            _linear_fullk_kernel,
            out_shape=jax.ShapeDtypeStruct((n_pad, m_pad), x.dtype),
            grid_spec=pltpu.PrefetchScalarGridSpec(
                num_scalar_prefetch=0,
                grid=grid,
                in_specs=[
                    pl.BlockSpec((tile_n, k_pad), lambda i, j: (i, 0)),
                    pl.BlockSpec((k_pad, tile_m), lambda i, j: (0, j)),
                    pl.BlockSpec((1, tile_m), lambda i, j: (0, j)),
                ],
                out_specs=pl.BlockSpec((tile_n, tile_m), lambda i, j: (i, j)),
            ),
            compiler_params=pltpu.CompilerParams(
                dimension_semantics=("parallel", "parallel"),
                vmem_limit_bytes=vmem_limit,
            ),
            cost_estimate=cost,
        )(xp, wt, bias_p)
    else:
        grid = (n_pad // tile_n, m_pad // tile_m, k_pad // tile_k)
        out_padded = pl.pallas_call(
            _linear_ktiled_kernel,
            out_shape=jax.ShapeDtypeStruct((n_pad, m_pad), x.dtype),
            grid_spec=pltpu.PrefetchScalarGridSpec(
                num_scalar_prefetch=0,
                grid=grid,
                in_specs=[
                    pl.BlockSpec((tile_n, tile_k), lambda i, j, k: (i, k)),
                    pl.BlockSpec((tile_k, tile_m), lambda i, j, k: (k, j)),
                    pl.BlockSpec((1, tile_m), lambda i, j, k: (0, j)),
                ],
                out_specs=pl.BlockSpec((tile_n, tile_m), lambda i, j, k: (i, j)),
                scratch_shapes=[pltpu.VMEM((tile_n, tile_m), jnp.float32)],
            ),
            compiler_params=pltpu.CompilerParams(
                dimension_semantics=("parallel", "parallel", "arbitrary"),
                vmem_limit_bytes=vmem_limit,
            ),
            cost_estimate=cost,
        )(xp, wt, bias_p)

    y = out_padded[:n, :out_dim]
    return y.reshape(*orig_shape[:-1], out_dim)


def _ref_forward(x, weight, bias):
    # Pure-JAX reference matching torch.nn.Linear semantics.
    return x @ weight.T + bias


if __name__ == "__main__":
    key = jax.random.PRNGKey(0)
    k_x, k_w, k_b = jax.random.split(key, 3)

    # Small shapes consistent with ProjHead(input_dim, output_dim).
    N = 8
    INPUT_DIM = 32
    OUTPUT_DIM = 16

    x = jax.random.normal(k_x, (N, INPUT_DIM), dtype=jnp.float32)

    # Deterministic synthetic parameters (shapes from nn.Linear.__init__).
    bound = 1.0 / (INPUT_DIM ** 0.5)
    weight = jax.random.uniform(
        k_w, (OUTPUT_DIM, INPUT_DIM), jnp.float32, -bound, bound)
    bias = jax.random.uniform(
        k_b, (OUTPUT_DIM,), jnp.float32, -bound, bound)

    # Transpose + pad ONCE at init (hoisted out of the per-call path).
    wt, bp = proj_head_prepare_params(weight, bias)

    fwd = jax.jit(proj_head_forward, static_argnames=("out_dim",))
    y = fwd(x, wt, bp, out_dim=OUTPUT_DIM)
    y = jax.block_until_ready(y)

    y_ref = _ref_forward(x, weight, bias)
    assert y.shape == (N, OUTPUT_DIM)
    assert jnp.allclose(y, y_ref, atol=1e-5, rtol=1e-5), "mismatch vs reference"

    print("KERNEL_OK")
</pallas_src>

<mosaic_0001>
module attributes {stable_mosaic.version = 11 : i64} {
  func.func @_linear_fullk_kernel(%arg0: i32, %arg1: i32, %arg2: memref<8x128xf32, #tpu.memory_space<vmem>>, %arg3: memref<128x128xf32, #tpu.memory_space<vmem>>, %arg4: memref<1x128xf32, #tpu.memory_space<vmem>>, %arg5: memref<8x128xf32, #tpu.memory_space<vmem>>) attributes {dimension_semantics = [#tpu.dimension_semantics<parallel>, #tpu.dimension_semantics<parallel>], iteration_bounds = array<i64: 1, 1>, scalar_prefetch = 0 : i64, scratch_operands = 0 : i64, tpu.core_type = #tpu.core_type<tc>, window_params = [{transform_indices = @transform_0, window_bounds = array<i64: 8, 128>}, {transform_indices = @transform_1, window_bounds = array<i64: 128, 128>}, {transform_indices = @transform_2, window_bounds = array<i64: 1, 128>}, {transform_indices = @transform_3, window_bounds = array<i64: 8, 128>}]} {
    %c0 = arith.constant 0 : index
    %c0_0 = arith.constant 0 : index
    %0 = vector.load %arg2[%c0, %c0_0] : memref<8x128xf32, #tpu.memory_space<vmem>>, vector<8x128xf32>
    %c0_1 = arith.constant 0 : index
    %c0_2 = arith.constant 0 : index
    %1 = vector.load %arg3[%c0_1, %c0_2] : memref<128x128xf32, #tpu.memory_space<vmem>>, vector<128x128xf32>
    %cst = arith.constant dense<0.000000e+00> : vector<8x128xf32>
    %2 = tpu.matmul %0, %1, %cst {dimension_numbers = #tpu.dot_dimension_numbers<[1], [0], [0], [1], [0, 0, 1, 1], [], []>} : vector<8x128xf32>, vector<128x128xf32>, vector<8x128xf32> -> vector<8x128xf32>
    %c0_3 = arith.constant 0 : index
    %c0_4 = arith.constant 0 : index
    %3 = vector.load %arg4[%c0_3, %c0_4] : memref<1x128xf32, #tpu.memory_space<vmem>>, vector<1x128xf32>
    %4 = vector.broadcast %3 : vector<1x128xf32> to vector<8x128xf32>
    %5 = arith.addf %2, %4 : vector<8x128xf32>
    %c0_5 = arith.constant 0 : index
    %c0_6 = arith.constant 0 : index
    %6 = vector.load %arg5[%c0_5, %c0_6] : memref<8x128xf32, #tpu.memory_space<vmem>>, vector<8x128xf32>
    tpu.vector_store %arg5[%c0_5, %c0_6], %5 {strides = array<i32>} : memref<8x128xf32, #tpu.memory_space<vmem>>, vector<8x128xf32>,
    return
  }
  func.func @transform_0(%arg0: i32, %arg1: i32) -> (i32, i32) {
    %c0_i32 = arith.constant 0 : i32
    %c0_i32_0 = arith.constant 0 : i32
    return %arg0, %c0_i32 : i32, i32
  }
  func.func @transform_1(%arg0: i32, %arg1: i32) -> (i32, i32) {
    %c0_i32 = arith.constant 0 : i32
    %c0_i32_0 = arith.constant 0 : i32
    return %c0_i32, %arg1 : i32, i32
  }
  func.func @transform_2(%arg0: i32, %arg1: i32) -> (i32, i32) {
    %c0_i32 = arith.constant 0 : i32
    %c0_i32_0 = arith.constant 0 : i32
    return %c0_i32, %arg1 : i32, i32
  }
  func.func @transform_3(%arg0: i32, %arg1: i32) -> (i32, i32) {
    %c0_i32 = arith.constant 0 : i32
    return %arg0, %arg1 : i32, i32
  }
}

</mosaic_0001>

<bundles_post_ra>
// kernel: proj_head_forward.1
= control target key start
LH: loop header
LB: loop body
LE: loop exit
PB: predicated region body
PF: predicated region fallthrough
CT: control target
= control target key end

     0   :  { %8 = vsyncpa [#allocation3], 0  ;;  %s280_s0 = inlined_call_operand.vmem [shape: f32[8,128], index: 0, kind: input, shape index: {}]   ;;  %s281_s1 = inlined_call_operand.hbm [shape: f32[128,128], index: 1, kind: input, shape index: {}]   ;;  %s282_s2 = inlined_call_operand.vmem [shape: f32[1,128], index: 2, kind: input, shape index: {}]   ;;  %s283_s3 = inlined_call_operand.hbm [shape: f32[8,128], index: 3, kind: output, shape index: {}]  }
   0x1   :  { %9 = vsyncpa [#allocation4], 0  ;;  %s242_s12 = smov [#allocation2]  }
   0x2   :  { %s17_s13 = sshll.u32 %s242_s12, 4  ;;  %s18_s13 = int_to_ptr.vmem [resolvable:$true] %s17_s13 }
   0x3   :  { %s206_s14 = scalar_lea.vmem %s18_s13, 2048  ;;  %p211_p1 = scmp.lt.s32.totalorder %s18_s13, %s18_s13 }
   0x4   :  { %p207_p0 = scmp.ne.s32.totalorder %s18_s13, %s206_s14  ;;  %p212_p2 = scmp.lt.s32.totalorder %s206_s14, %s206_s14 }
   0x6   :  { %p213_p3 = por %p212_p2, %p211_p1 }
   0x8   :  { %p214_p4 = pnand %p213_p3, %p207_p0 }
   0xa   :  { %217 = shalt.err (!%p214_p4)
}
   0xb   :  { %s243_s15 = smov 128   ;;  %s244_s16 = smov 8  }
   0xc   :  { %23 = dma.hbm_to_vmem [thread:$0]  %s281_s1, 2048, %s18_s13, [#allocation3], %s243_s15, %s243_s15, %s244_s16  }
   0xd   :  { %238 = dma.done.wait [#allocation3], 2048  }
   0xe   :  { %239 = vsyncadd [#allocation3], 4294965248  ;;  %v245_v0 = vmov 0.0   ;;  %vm246_vm0 = vmmov 0   ;;  %v45_v1 = vld [vmem:[#allocation2 + $0x78] sm:$0xff]  ;;  %v44_v2 = vld [vmem:[#allocation2 + $0x70] sm:$0xff] }
   0xf   :  { %157 = vmatprep.subr.mxu0 %v245_v0  ;;  %189 = vmatprep.mubr.msk.f32.mxu0 %vm246_vm0, %v245_v0  ;;  %v43_v3 = vld [vmem:[#allocation2 + $0x68] sm:$0xff]  ;;  %v42_v4 = vld [vmem:[#allocation2 + $0x60] sm:$0xff]  ;;  %v41_v5 = vld [vmem:[#allocation2 + $0x58] sm:$0xff]  ;;  %s247_s22 = smov [#allocation5]  }
  0x10   :  { %158 = vmatpush3.msra.mxu0 %v45_v1  ;;  %v40_v6 = vld [vmem:[#allocation2 + $0x50] sm:$0xff]  ;;  %v39_v7 = vld [vmem:[#allocation2 + $0x48] sm:$0xff]  ;;  %v38_v8 = vld [vmem:[#allocation2 + $0x40] sm:$0xff]  ;;  %s130_s23 = sshll.u32 %s247_s22, 4  ;;  %s131_s23 = int_to_ptr.vmem [resolvable:$true] %s130_s23 }
  0x11   :  { %159 = vmatprep.subr.mxu0 %v245_v0  ;;  %v37_v9 = vld [vmem:[#allocation2 + $0x38] sm:$0xff]  ;;  %v36_v10 = vld [vmem:[#allocation2 + $0x30] sm:$0xff]  ;;  %v35_v11 = vld [vmem:[#allocation2 + $0x28] sm:$0xff]  ;;  %s218_s24 = scalar_lea.vmem %s131_s23, 128  ;;  %p223_p6 = scmp.lt.s32.totalorder %s131_s23, %s131_s23 }
  0x12   :  { %160 = vmatpush3.msra.mxu0 %v44_v2  ;;  %v34_v12 = vld [vmem:[#allocation2 + $0x20] sm:$0xff]  ;;  %v33_v13 = vld [vmem:[#allocation2 + $0x18] sm:$0xff]  ;;  %v32_v14 = vld [vmem:[#allocation2 + $0x10] sm:$0xff]  ;;  %p219_p5 = scmp.ne.s32.totalorder %s131_s23, %s218_s24  ;;  %p224_p7 = scmp.lt.s32.totalorder %s218_s24, %s218_s24 }
  0x13   :  { %161 = vmatprep.subr.mxu0 %v245_v0  ;;  %v31_v15 = vld [vmem:[#allocation2 + $0x8] sm:$0xff]  ;;  %v30_v16 = vld [vmem:[#allocation2] sm:$0xff] }
  0x14   :  { %162 = vmatpush3.msra.mxu0 %v43_v3  ;;  %v29_v17 = vld [vmem:[%s280_s0] sm:$0xff]  ;;  %p225_p8 = por %p224_p7, %p223_p6 }
  0x15   :  { %163 = vmatprep.subr.mxu0 %v245_v0  ;;  %v139_v18 = vld [vmem:[%s282_s2] ss:$0 sm:$0xff] }
  0x16   :  { %164 = vmatpush3.msra.mxu0 %v42_v4  ;;  %p226_p9 = pnand %p225_p8, %p219_p5 }
  0x17   :  { %165 = vmatprep.subr.mxu0 %v245_v0 }
  0x18   :  { %166 = vmatpush3.msra.mxu0 %v41_v5 }
  0x19   :  { %167 = vmatprep.subr.mxu0 %v245_v0 }
  0x1a   :  { %168 = vmatpush3.msra.mxu0 %v40_v6 }
  0x1b   :  { %169 = vmatprep.subr.mxu0 %v245_v0 }
  0x1c   :  { %170 = vmatpush3.msra.mxu0 %v39_v7 }
  0x1d   :  { %171 = vmatprep.subr.mxu0 %v245_v0 }
  0x1e   :  { %172 = vmatpush3.msra.mxu0 %v38_v8 }
  0x1f   :  { %173 = vmatprep.subr.mxu0 %v245_v0 }
  0x20   :  { %174 = vmatpush3.msra.mxu0 %v37_v9 }
  0x21   :  { %175 = vmatprep.subr.mxu0 %v245_v0 }
  0x22   :  { %176 = vmatpush3.msra.mxu0 %v36_v10 }
  0x23   :  { %177 = vmatprep.subr.mxu0 %v245_v0 }
  0x24   :  { %178 = vmatpush3.msra.mxu0 %v35_v11 }
  0x25   :  { %179 = vmatprep.subr.mxu0 %v245_v0 }
  0x26   :  { %180 = vmatpush3.msra.mxu0 %v34_v12 }
  0x27   :  { %181 = vmatprep.subr.mxu0 %v245_v0 }
  0x28   :  { %182 = vmatpush3.msra.mxu0 %v33_v13 }
  0x29   :  { %183 = vmatprep.subr.mxu0 %v245_v0 }
  0x2a   :  { %184 = vmatpush3.msra.mxu0 %v32_v14 }
  0x2b   :  { %185 = vmatprep.subr.mxu0 %v245_v0 }
  0x2c   :  { %186 = vmatpush3.msra.mxu0 %v31_v15 }
  0x2d   :  { %187 = vmatprep.subr.mxu0 %v245_v0 }
  0x2e   :  { %188 = vmatpush3.msra.mxu0 %v30_v16 }
  0x2f   :  { %190 = vmatmul.mubr.f32.vlgmr.msra.gmra.mxu0 %v29_v17 }
  0xef   :  { %v119_v19 = vpop.f32.mrf.mxu0 }
  0xf0   :  { %v120_v20 = vadd.f32 %v139_v18, %v119_v19 }
  0xf1   :  { %v191_v21 = vpop.f32.mrf.mxu0 }
  0xf2   :  { %123 = vst [vmem:[#allocation5] sm:$0xff] %v120_v20 }
  0xf3   :  { %229 = shalt.err (!%p226_p9)
}
  0xf4   :  { %133 = dma.vmem_to_hbm [thread:$0]  %s131_s23, 128, %s283_s3, [#allocation4]  }
  0xf5   :  { %240 = dma.done.wait [#allocation4], 128  }
  0xf6   :  { %241 = vsyncadd [#allocation4], 4294967168 }
  0xf7   :  { %137 = vsyncpa [#allocation3], 1 }
  0xf8   :  { %138 = vsyncpa [#allocation4], 1 }

</bundles_post_ra>
